<compile_context>
chip_gen: v7x
topology: tpu7x:2x2x1
jax: 0.10.0
libtpu: 0.0.40
codegen_flags: <defaults>
</compile_context>

<pallas_src>
import functools

import jax
import jax.numpy as jnp
import numpy as np
from jax import lax
from jax.experimental import pallas as pl
from jax.experimental.pallas import tpu as pltpu


# ----------------------------- Pallas kernel ------------------------------- #

def _basic_block_kernel(x_ref, w1_ref, b1_ref, w2_ref, b2_ref, m1_ref, out_ref,
                        *, offsets, tap_start, len1, len2, id_off):
    """Fused: conv1 -> bn1 -> relu -> conv2 -> bn2 -> +identity -> relu.

    x_ref : (1, Cp, L0)   bf16  flattened zero-padded image slab
    w*_ref: (Cp, 9*Cp)    bf16  per-tap weights with BN scale folded in
    b*_ref: (Cp, 1)       f32   folded BatchNorm bias
    m1_ref: (1, len1)     f32   interior mask for the conv1 output grid
    out   : (1, Cp, len2)       padded-grid output (wrapper slices interior)
    """
    x = x_ref[0]                                           # (Cp, L0) bf16

    def conv_taps(u, start, length):
        # (Cp, L) bf16 -> (9*Cp, length) bf16: nine shifted lane slices stacked
        # on the sublane axis (Cp % 16 == 0 -> bf16 tile-aligned concat).
        return jnp.concatenate(
            [u[:, start + o: start + o + length] for o in offsets], axis=0)

    # conv1 (BN scale already folded into w1) -> +b1 -> relu -> interior mask.
    h1 = jnp.dot(w1_ref[...], conv_taps(x, tap_start, len1),
                 preferred_element_type=jnp.float32)       # (Cp, len1) f32
    h1 = (jnp.maximum(h1 + b1_ref[...], 0.0) * m1_ref[...]).astype(jnp.bfloat16)

    # conv2 (BN scale folded) -> +b2 -> +identity -> relu.
    y = jnp.dot(w2_ref[...], conv_taps(h1, 0, len2),
                preferred_element_type=jnp.float32)        # (Cp, len2) f32
    identity = x[:, id_off:id_off + len2].astype(jnp.float32)
    out_ref[0] = jnp.maximum(y + b2_ref[...] + identity, 0.0).astype(out_ref.dtype)


# ------------------------------ JAX wrapper -------------------------------- #

def _round_up(v, m):
    return (v + m - 1) // m * m


def basic_block_v1b(x_nchw, params, *, out_dtype=jnp.float32):
    """Forward pass of BasicBlockV1b (stride=1, dilation=1, no downsample)."""
    n, c, h, w = x_nchw.shape
    hp, wp = h + 2, w + 2                 # 1-pixel zero-padded spatial dims
    grid_len = hp * wp                    # flattened padded grid
    margin = wp + 1                       # flat halo one 3x3 conv consumes

    cp = params["w1t"].shape[0]           # channels padded to a multiple of 16
    assert params["w1t"].shape == (cp, 9 * cp) and c <= cp, \
        "residual path requires inplanes == planes (stride=1, no downsample)"

    # 128-aligned lane layout.
    len2 = _round_up(grid_len, 128)              # conv2 / output lane width
    base = _round_up(2 * margin, 128)            # slab offset of padded image (= id_off)
    len1 = _round_up(len2 + 2 * margin, 128)     # conv1 output slab width
    ls0 = _round_up(base + len1, 128)            # input slab width
    tap_start = base - 2 * margin                # start of conv1 tap window
    offsets = tuple(ky * wp + kx for ky in range(3) for kx in range(3))

    # Channel pad -> cp, 1-pixel spatial zero ring, flatten, slab pad; bf16.
    xp = jnp.pad(x_nchw, ((0, 0), (0, cp - c), (1, 1), (1, 1)))      # (N,Cp,Hp,Wp)
    x_s = jnp.pad(xp.reshape(n, cp, grid_len),
                  ((0, 0), (0, 0), (base, ls0 - base - grid_len)))
    x_s = x_s.astype(jnp.bfloat16)                                   # (N,Cp,L0)

    # Interior mask for the conv1 output slab (host-side, tiny, loaded once).
    j = np.arange(len1)
    p = j - margin
    r, q = p // wp, p % wp
    interior = (p >= 0) & (r >= 1) & (r <= h) & (q >= 1) & (q <= w)
    m1 = jnp.asarray(interior.astype(np.float32)).reshape(1, len1)

    kernel = functools.partial(_basic_block_kernel, offsets=offsets,
                               tap_start=tap_start, len1=len1, len2=len2,
                               id_off=base)

    out_s = pl.pallas_call(
        kernel,
        out_shape=jax.ShapeDtypeStruct((n, cp, len2), out_dtype),
        grid_spec=pltpu.PrefetchScalarGridSpec(
            num_scalar_prefetch=0,
            grid=(n,),
            in_specs=[
                pl.BlockSpec((1, cp, ls0), lambda i: (i, 0, 0)),   # x slab
                pl.BlockSpec((cp, 9 * cp), lambda i: (0, 0)),      # w1 (scale folded)
                pl.BlockSpec((cp, 1), lambda i: (0, 0)),           # b1
                pl.BlockSpec((cp, 9 * cp), lambda i: (0, 0)),      # w2 (scale folded)
                pl.BlockSpec((cp, 1), lambda i: (0, 0)),           # b2
                pl.BlockSpec((1, len1), lambda i: (0, 0)),         # interior mask
            ],
            out_specs=pl.BlockSpec((1, cp, len2), lambda i: (i, 0, 0)),
        ),
        compiler_params=pltpu.CompilerParams(
            dimension_semantics=("parallel",),
            vmem_limit_bytes=32 * 1024 * 1024),
    )(x_s, params["w1t"], params["b1"], params["w2t"], params["b2"], m1)

    # (N, Cp, len2) -> NCHW interior; drops padded channels, lane pad and ring.
    out = out_s[:, :c, :grid_len].reshape(n, c, hp, wp)[:, :, 1:h + 1, 1:w + 1]
    return out


# ------------------------- parameter construction -------------------------- #

def _fold_bn(gamma, beta, mean, var, eps=1e-5):
    scale = gamma / jnp.sqrt(var + eps)
    return scale, beta - mean * scale


def make_params(key, inplanes, planes):
    assert inplanes == planes, \
        "BasicBlockV1b without downsample needs inplanes == planes"
    cp = _round_up(planes, 16)            # bf16 sublane-tile aligned channels
    ks = jax.random.split(key, 10)
    w1_hwio = 0.1 * jax.random.normal(ks[0], (3, 3, inplanes, planes), jnp.float32)
    w2_hwio = 0.1 * jax.random.normal(ks[1], (3, 3, planes, planes), jnp.float32)

    g1 = 1.0 + 0.1 * jax.random.normal(ks[2], (planes,), jnp.float32)
    be1 = 0.1 * jax.random.normal(ks[3], (planes,), jnp.float32)
    mu1 = 0.05 * jax.random.normal(ks[4], (planes,), jnp.float32)
    v1 = 0.5 + jax.random.uniform(ks[5], (planes,), jnp.float32)
    g2 = 1.0 + 0.1 * jax.random.normal(ks[6], (planes,), jnp.float32)
    be2 = 0.1 * jax.random.normal(ks[7], (planes,), jnp.float32)
    mu2 = 0.05 * jax.random.normal(ks[8], (planes,), jnp.float32)
    v2 = 0.5 + jax.random.uniform(ks[9], (planes,), jnp.float32)

    s1, b1 = _fold_bn(g1, be1, mu1, v1)
    s2, b2 = _fold_bn(g2, be2, mu2, v2)

    def tap_weights(w_hwio, scale):
        # (3,3,Cin,Cout) -> (Cp, 9*Cp), tap-major / channel-minor, BN scale
        # folded per output channel in f32 BEFORE the bf16 cast.
        cin, cout = w_hwio.shape[2], w_hwio.shape[3]
        wt = jnp.transpose(w_hwio, (3, 0, 1, 2)) * scale[:, None, None, None]
        wt = jnp.pad(wt, ((0, cp - cout), (0, 0), (0, 0), (0, cp - cin)))
        return wt.reshape(cp, 9 * cp).astype(jnp.bfloat16)

    def pad_vec(v):
        return jnp.pad(v, (0, cp - v.shape[0])).reshape(cp, 1)

    return {
        "w1t": tap_weights(w1_hwio, s1), "w2t": tap_weights(w2_hwio, s2),
        "b1": pad_vec(b1), "b2": pad_vec(b2),
        # f32 scale-folded HWIO weights kept for the pure-JAX reference check
        "w1_hwio_folded": w1_hwio * s1[None, None, None, :],
        "w2_hwio_folded": w2_hwio * s2[None, None, None, :],
    }


def reference_forward(x_nchw, p):
    """Pure-JAX reference (lax.conv, same bf16-operand / f32-accumulate recipe)."""
    c = x_nchw.shape[1]
    xb = jnp.transpose(x_nchw, (0, 2, 3, 1)).astype(jnp.bfloat16)   # NHWC bf16
    b1 = p["b1"][:c, 0]
    b2 = p["b2"][:c, 0]

    def conv(y, w_f32):
        return lax.conv_general_dilated(
            y.astype(jnp.bfloat16), w_f32.astype(jnp.bfloat16),
            (1, 1), ((1, 1), (1, 1)),
            dimension_numbers=("NHWC", "HWIO", "NHWC"),
            preferred_element_type=jnp.float32)

    h1 = jnp.maximum(conv(xb, p["w1_hwio_folded"]) + b1, 0.0)
    y = conv(h1, p["w2_hwio_folded"]) + b2 + xb.astype(jnp.float32)
    out = jnp.maximum(y, 0.0)
    return jnp.transpose(out, (0, 3, 1, 2))


# --------------------------------- main ------------------------------------ #

if __name__ == "__main__":
    key = jax.random.PRNGKey(0)
    k_x, k_p = jax.random.split(key)

    N, C, H, W = 2, 4, 16, 16             # inplanes == planes == 4, stride=1
    x = jax.random.normal(k_x, (N, C, H, W), jnp.float32)
    params = make_params(k_p, C, C)

    out = jax.block_until_ready(basic_block_v1b(x, params))
    ref = jax.block_until_ready(reference_forward(x, params))

    assert out.shape == (N, C, H, W)
    err = float(np.max(np.abs(np.asarray(out) - np.asarray(ref))))
    assert np.allclose(np.asarray(out), np.asarray(ref), rtol=2e-3, atol=2e-3), \
        f"Pallas output does not match reference (max abs err {err})"

    print("KERNEL_OK")
</pallas_src>

<mosaic_0001>
module attributes {stable_mosaic.version = 11 : i64} {
  func.func @_basic_block_kernel(%arg0: i32, %arg1: memref<1x16x640xbf16, #tpu.memory_space<vmem>>, %arg2: memref<16x144xbf16, #tpu.memory_space<vmem>>, %arg3: memref<16x1xf32, #tpu.memory_space<vmem>>, %arg4: memref<16x144xbf16, #tpu.memory_space<vmem>>, %arg5: memref<16x1xf32, #tpu.memory_space<vmem>>, %arg6: memref<1x512xf32, #tpu.memory_space<vmem>>, %arg7: memref<1x16x384xf32, #tpu.memory_space<vmem>>) attributes {dimension_semantics = [#tpu.dimension_semantics<parallel>], iteration_bounds = array<i64: 2>, scalar_prefetch = 0 : i64, scratch_operands = 0 : i64, tpu.core_type = #tpu.core_type<tc>, window_params = [{transform_indices = @transform_0, window_bounds = array<i64: 1, 16, 640>}, {pipeline_mode = #tpu.pipeline_mode<synchronous>, transform_indices = @transform_1, window_bounds = array<i64: 16, 144>}, {pipeline_mode = #tpu.pipeline_mode<synchronous>, transform_indices = @transform_2, window_bounds = array<i64: 16, 1>}, {pipeline_mode = #tpu.pipeline_mode<synchronous>, transform_indices = @transform_3, window_bounds = array<i64: 16, 144>}, {pipeline_mode = #tpu.pipeline_mode<synchronous>, transform_indices = @transform_4, window_bounds = array<i64: 16, 1>}, {pipeline_mode = #tpu.pipeline_mode<synchronous>, transform_indices = @transform_5, window_bounds = array<i64: 1, 512>}, {transform_indices = @transform_6, window_bounds = array<i64: 1, 16, 384>}]} {
    %c0 = arith.constant 0 : index
    %c0_0 = arith.constant 0 : index
    %c0_1 = arith.constant 0 : index
    %0 = vector.load %arg1[%c0, %c0_0, %c0_1] : memref<1x16x640xbf16, #tpu.memory_space<vmem>>, vector<1x16x640xbf16>
    %1 = vector.shape_cast %0 : vector<1x16x640xbf16> to vector<16x640xbf16>
    %c0_2 = arith.constant 0 : index
    %c0_3 = arith.constant 0 : index
    %2 = vector.load %arg2[%c0_2, %c0_3] : memref<16x144xbf16, #tpu.memory_space<vmem>>, vector<16x144xbf16>
    %3 = vector.extract_strided_slice %1 {offsets = [0, 90], sizes = [16, 512], strides = [1, 1]} : vector<16x640xbf16> to vector<16x512xbf16>
    %4 = vector.extract_strided_slice %1 {offsets = [0, 91], sizes = [16, 512], strides = [1, 1]} : vector<16x640xbf16> to vector<16x512xbf16>
    %5 = vector.extract_strided_slice %1 {offsets = [0, 92], sizes = [16, 512], strides = [1, 1]} : vector<16x640xbf16> to vector<16x512xbf16>
    %6 = vector.extract_strided_slice %1 {offsets = [0, 108], sizes = [16, 512], strides = [1, 1]} : vector<16x640xbf16> to vector<16x512xbf16>
    %7 = vector.extract_strided_slice %1 {offsets = [0, 109], sizes = [16, 512], strides = [1, 1]} : vector<16x640xbf16> to vector<16x512xbf16>
    %8 = vector.extract_strided_slice %1 {offsets = [0, 110], sizes = [16, 512], strides = [1, 1]} : vector<16x640xbf16> to vector<16x512xbf16>
    %9 = vector.extract_strided_slice %1 {offsets = [0, 126], sizes = [16, 512], strides = [1, 1]} : vector<16x640xbf16> to vector<16x512xbf16>
    %10 = vector.extract_strided_slice %1 {offsets = [0, 127], sizes = [16, 512], strides = [1, 1]} : vector<16x640xbf16> to vector<16x512xbf16>
    %11 = vector.extract_strided_slice %1 {offsets = [0, 128], sizes = [16, 512], strides = [1, 1]} : vector<16x640xbf16> to vector<16x512xbf16>
    %12 = tpu.concatenate %3, %4, %5, %6, %7, %8, %9, %10, %11 in 0 : vector<16x512xbf16>, vector<16x512xbf16>, vector<16x512xbf16>, vector<16x512xbf16>, vector<16x512xbf16>, vector<16x512xbf16>, vector<16x512xbf16>, vector<16x512xbf16>, vector<16x512xbf16> -> vector<144x512xbf16>
    %cst = arith.constant dense<0.000000e+00> : vector<16x512xf32>
    %13 = tpu.matmul %2, %12, %cst {dimension_numbers = #tpu.dot_dimension_numbers<[1], [0], [0], [1], [0, 0, 1, 1], [], []>} : vector<16x144xbf16>, vector<144x512xbf16>, vector<16x512xf32> -> vector<16x512xf32>
    %c0_4 = arith.constant 0 : index
    %c0_5 = arith.constant 0 : index
    %14 = vector.load %arg3[%c0_4, %c0_5] : memref<16x1xf32, #tpu.memory_space<vmem>>, vector<16x1xf32>
    %15 = vector.broadcast %14 : vector<16x1xf32> to vector<16x512xf32>
    %16 = arith.addf %13, %15 : vector<16x512xf32>
    %cst_6 = arith.constant 0.000000e+00 : f32
    %17 = vector.broadcast %cst_6 : f32 to vector<16x512xf32>
    %18 = arith.maximumf %16, %17 : vector<16x512xf32>
    %c0_7 = arith.constant 0 : index
    %c0_8 = arith.constant 0 : index
    %19 = vector.load %arg6[%c0_7, %c0_8] : memref<1x512xf32, #tpu.memory_space<vmem>>, vector<1x512xf32>
    %20 = vector.broadcast %19 : vector<1x512xf32> to vector<16x512xf32>
    %21 = arith.mulf %18, %20 : vector<16x512xf32>
    %22 = arith.truncf %21 : vector<16x512xf32> to vector<16x512xbf16>
    %c0_9 = arith.constant 0 : index
    %c0_10 = arith.constant 0 : index
    %23 = vector.load %arg4[%c0_9, %c0_10] : memref<16x144xbf16, #tpu.memory_space<vmem>>, vector<16x144xbf16>
    %24 = vector.extract_strided_slice %22 {offsets = [0, 0], sizes = [16, 384], strides = [1, 1]} : vector<16x512xbf16> to vector<16x384xbf16>
    %25 = vector.extract_strided_slice %22 {offsets = [0, 1], sizes = [16, 384], strides = [1, 1]} : vector<16x512xbf16> to vector<16x384xbf16>
    %26 = vector.extract_strided_slice %22 {offsets = [0, 2], sizes = [16, 384], strides = [1, 1]} : vector<16x512xbf16> to vector<16x384xbf16>
    %27 = vector.extract_strided_slice %22 {offsets = [0, 18], sizes = [16, 384], strides = [1, 1]} : vector<16x512xbf16> to vector<16x384xbf16>
    %28 = vector.extract_strided_slice %22 {offsets = [0, 19], sizes = [16, 384], strides = [1, 1]} : vector<16x512xbf16> to vector<16x384xbf16>
    %29 = vector.extract_strided_slice %22 {offsets = [0, 20], sizes = [16, 384], strides = [1, 1]} : vector<16x512xbf16> to vector<16x384xbf16>
    %30 = vector.extract_strided_slice %22 {offsets = [0, 36], sizes = [16, 384], strides = [1, 1]} : vector<16x512xbf16> to vector<16x384xbf16>
    %31 = vector.extract_strided_slice %22 {offsets = [0, 37], sizes = [16, 384], strides = [1, 1]} : vector<16x512xbf16> to vector<16x384xbf16>
    %32 = vector.extract_strided_slice %22 {offsets = [0, 38], sizes = [16, 384], strides = [1, 1]} : vector<16x512xbf16> to vector<16x384xbf16>
    %33 = tpu.concatenate %24, %25, %26, %27, %28, %29, %30, %31, %32 in 0 : vector<16x384xbf16>, vector<16x384xbf16>, vector<16x384xbf16>, vector<16x384xbf16>, vector<16x384xbf16>, vector<16x384xbf16>, vector<16x384xbf16>, vector<16x384xbf16>, vector<16x384xbf16> -> vector<144x384xbf16>
    %cst_11 = arith.constant dense<0.000000e+00> : vector<16x384xf32>
    %34 = tpu.matmul %23, %33, %cst_11 {dimension_numbers = #tpu.dot_dimension_numbers<[1], [0], [0], [1], [0, 0, 1, 1], [], []>} : vector<16x144xbf16>, vector<144x384xbf16>, vector<16x384xf32> -> vector<16x384xf32>
    %35 = vector.extract_strided_slice %1 {offsets = [0, 128], sizes = [16, 384], strides = [1, 1]} : vector<16x640xbf16> to vector<16x384xbf16>
    %36 = arith.extf %35 : vector<16x384xbf16> to vector<16x384xf32>
    %c0_12 = arith.constant 0 : index
    %c0_13 = arith.constant 0 : index
    %37 = vector.load %arg5[%c0_12, %c0_13] : memref<16x1xf32, #tpu.memory_space<vmem>>, vector<16x1xf32>
    %38 = vector.broadcast %37 : vector<16x1xf32> to vector<16x384xf32>
    %39 = arith.addf %34, %38 : vector<16x384xf32>
    %40 = arith.addf %39, %36 : vector<16x384xf32>
    %cst_14 = arith.constant 0.000000e+00 : f32
    %41 = vector.broadcast %cst_14 : f32 to vector<16x384xf32>
    %42 = arith.maximumf %40, %41 : vector<16x384xf32>
    %c0_15 = arith.constant 0 : index
    %c0_16 = arith.constant 0 : index
    %c0_17 = arith.constant 0 : index
    %43 = vector.load %arg7[%c0_15, %c0_16, %c0_17] : memref<1x16x384xf32, #tpu.memory_space<vmem>>, vector<1x16x384xf32>
    %44 = vector.shape_cast %43 : vector<1x16x384xf32> to vector<16x384xf32>
    %45 = vector.shape_cast %42 : vector<16x384xf32> to vector<1x16x384xf32>
    tpu.vector_store %arg7[%c0_15, %c0_16, %c0_17], %45 {strides = array<i32>} : memref<1x16x384xf32, #tpu.memory_space<vmem>>, vector<1x16x384xf32>,
    return
  }
  func.func @transform_0(%arg0: i32) -> (i32, i32, i32) {
    %c0_i32 = arith.constant 0 : i32
    %c0_i32_0 = arith.constant 0 : i32
    %c0_i32_1 = arith.constant 0 : i32
    return %arg0, %c0_i32, %c0_i32_0 : i32, i32, i32
  }
  func.func @transform_1(%arg0: i32) -> (i32, i32) {
    %c0_i32 = arith.constant 0 : i32
    %c0_i32_0 = arith.constant 0 : i32
    %c0_i32_1 = arith.constant 0 : i32
    return %c0_i32, %c0_i32_0 : i32, i32
  }
  func.func @transform_2(%arg0: i32) -> (i32, i32) {
    %c0_i32 = arith.constant 0 : i32
    %c0_i32_0 = arith.constant 0 : i32
    %c0_i32_1 = arith.constant 0 : i32
    return %c0_i32, %c0_i32_0 : i32, i32
  }
  func.func @transform_3(%arg0: i32) -> (i32, i32) {
    %c0_i32 = arith.constant 0 : i32
    %c0_i32_0 = arith.constant 0 : i32
    %c0_i32_1 = arith.constant 0 : i32
    return %c0_i32, %c0_i32_0 : i32, i32
  }
  func.func @transform_4(%arg0: i32) -> (i32, i32) {
    %c0_i32 = arith.constant 0 : i32
    %c0_i32_0 = arith.constant 0 : i32
    %c0_i32_1 = arith.constant 0 : i32
    return %c0_i32, %c0_i32_0 : i32, i32
  }
  func.func @transform_5(%arg0: i32) -> (i32, i32) {
    %c0_i32 = arith.constant 0 : i32
    %c0_i32_0 = arith.constant 0 : i32
    %c0_i32_1 = arith.constant 0 : i32
    return %c0_i32, %c0_i32_0 : i32, i32
  }
  func.func @transform_6(%arg0: i32) -> (i32, i32, i32) {
    %c0_i32 = arith.constant 0 : i32
    %c0_i32_0 = arith.constant 0 : i32
    %c0_i32_1 = arith.constant 0 : i32
    return %arg0, %c0_i32, %c0_i32_0 : i32, i32, i32
  }
}

</mosaic_0001>

<bundles_post_ra>
// kernel: tpu_custom_call.1
= control target key start
LH: loop header
LB: loop body
LE: loop exit
PB: predicated region body
PF: predicated region fallthrough
CT: control target
= control target key end

     0   :  { %11 = vsyncpa [#allocation3], 0  ;;  %s1763_s0 = inlined_call_operand.hbm [shape: bf16[2,16,640], index: 0, kind: input, shape index: {}]   ;;  %s1764_s1 = inlined_call_operand.vmem [shape: bf16[16,144], index: 1, kind: input, shape index: {}]   ;;  %s1765_s2 = inlined_call_operand.vmem [shape: f32[16,1], index: 2, kind: input, shape index: {}]   ;;  %s1766_s3 = inlined_call_operand.vmem [shape: bf16[16,144], index: 3, kind: input, shape index: {}]   ;;  %s1767_s4 = inlined_call_operand.vmem [shape: f32[16,1], index: 4, kind: input, shape index: {}]   ;;  %s1768_s5 = inlined_call_operand.vmem [shape: f32[1,512], index: 5, kind: input, shape index: {}]   ;;  %s1769_s6 = inlined_call_operand.hbm [shape: f32[2,16,384], index: 6, kind: output, shape index: {}]  }
   0x1   :  { %13 = vsyncpa [#allocation3 + $0x1], 0 }
   0x2   :  { %14 = vsyncpa [#allocation4], 0 }
   0x3   :  { %16 = vsyncpa [#allocation4 + $0x1], 0  ;;  %s1329_s21 = smov 0   ;;  %s1331_s22 = smov 0  }
   0x4   :  { %s1333_s23 = smov 0   ;;  %s1335_s24 = smov 0  }
   0x5 LB: > { %s1350_s25 = sadd.s32 4294967295, %s1276_s24   ;;  %s1081_s26 = sadd.s32 4294967294, %s1276_s24   ;;  %s1276_s24 = sphi %s1335_s24, %s1781_s24   ;;  %s1272_s23 = sphi %s1333_s23, %s1780_s23   ;;  %s1268_s22 = sphi %s1331_s22, %s1779_s22   ;;  %s1264_s21 = sphi %s1329_s21, %s1778_s21  }
   0x6   : > { %s1354_s27 = sadd.s32 1, %s1276_s24   ;;  %s29_s28 = sadd.s32 1, %s1272_s23 }
   0x7   : > { %s26_s29 = ssub.s32 %s1276_s24, %s1354_s27  ;;  %p36_p0 = scmp.ne.s32.totalorder %s1272_s23, %s1268_s22 }
   0x8   : > { %p27_p1 = scmp.eq.s32.totalorder %s26_s29, 0  ;;  %p37_p2 = scmp.eq.s32.totalorder %s1276_s24, 0 }
   0x9   : > { %p42_p3 = scmp.ne.s32.totalorder %s1268_s22, %s1264_s21  ;;  %p43_p4 = scmp.eq.s32.totalorder %s1350_s25, 0 }
   0xa   : > { %s1366_s30 = scalar_select %p27_p1, %s1272_s23, %s29_s28  }
   0xb   : > { %p38_p5 = por %p37_p2, %p36_p0  ;;  %p1368_p6 = por %p43_p4, %p42_p3 }
   0xc   : > { %p171_p7 = scmp.eq.s32.totalorder %s1350_s25, 1  ;;  %p177_p8 = scmp.eq.s32.totalorder %s1081_s26, 1 }
   0xd   : > { %p1119_p10 = scmp.lt.s32.totalorder %s1276_s24, 2  ;;  %s212_s10 = sand.u32 1, %s1272_s23  }
   0xe   : > { %p1375_p11 = por %p171_p7, %p36_p0  ;;  %p1379_p12 = por %p177_p8, %p42_p3 }
   0xf   : > { %s1103_s11 = smul.u32 640, %s1276_s24  ;;  %p1390_p13 = pnand %p1119_p10, %p38_p5 }
  0x10   : > { %s1772_s8 = scalar_select %p1375_p11, 1, 0 }
  0x11   : > { %s1773_s9 = scalar_select %p1379_p12, 1, 0 }
  0x12   : > { %s1102_s12 = smul.u32 40, %s212_s10  ;;  %s1388_s15 = scalar_lea.hbm %s1763_s0, %s1103_s11 }
  0x13   : > { %s1396_s19 = scalar_lea.sflag [#allocation3], %s212_s10  ;;  %s1180_s20 = scalar_lea.hbm %s1388_s15, 640 }
  0x14   : > { %s216_s17 = scalar_lea.vmem [#allocation2], %s1102_s12  ;;  %p1181_p0 = scmp.ne.s32.totalorder %s1388_s15, %s1180_s20 }
  0x15   : > { %s223_s18 = sshll.u32 %s216_s17, 4  ;;  %p1182_p1 = pneg %p1390_p13  ;;  %s1394_s18 = int_to_ptr.vmem [resolvable:$true] %s223_s18 }
  0x16   : > { %s1185_s29 = scalar_lea.hbm %s1763_s0, 1280  ;;  %p1186_p4 = scmp.lt.u32.totalorder %s1388_s15, %s1763_s0 }
  0x17   : > { %p1183_p2 = pnand %p1182_p1, %p1181_p0  ;;  %p1187_p5 = scmp.lt.u32.totalorder %s1185_s29, %s1180_s20 }
  0x18   : > { %p1189_p8 = scmp.lt.u32.totalorder %s1180_s20, %s1388_s15 }
  0x19   : > { %p1184_p3 = pneg %p1183_p2  ;;  %p1188_p7 = por %p1187_p5, %p1186_p4 }
  0x1b   : > { %p1190_p10 = por %p1189_p8, %p1188_p7 }
  0x1d   : > { %p1191_p9 = pnand %p1190_p10, %p1184_p3 }
  0x1f   : > { %1194 = shalt.err (!%p1191_p9)
}
  0x20   : > { %s1195_s10 = scalar_lea.vmem %s1394_s18, 640  ;;  %s1278_s12 = smov [#allocation2]  }
  0x21   : > { %p1196_p0 = scmp.ne.s32.totalorder %s1394_s18, %s1195_s10  ;;  %s1200_s14 = sshll.u32 %s1278_s12, 4  ;;  %s1201_s14 = int_to_ptr.vmem [resolvable:$false] %s1200_s14 }
  0x22   : > { %s1202_s17 = scalar_lea.vmem %s1201_s14, 1280  ;;  %p1203_p11 = scmp.lt.s32.totalorder %s1394_s18, %s1201_s14 }
  0x23   : > { %p1198_p2 = pnand %p1196_p0, %p1182_p1  ;;  %p1204_p4 = scmp.lt.s32.totalorder %s1202_s17, %s1195_s10 }
  0x25   : > { %p1199_p12 = pneg %p1198_p2  ;;  %p1205_p5 = por %p1204_p4, %p1203_p11 }
  0x27   : > { %p1206_p7 = pnand %p1205_p5, %p1199_p12 }
  0x29   : > { %1209 = shalt.err (!%p1206_p7)
}
  0x2a   : > { %s1279_s20 = smov 320   ;;  %s1280_s26 = smov 20  }
  0x2b   : > { %1114 = dma.hbm_to_vmem [thread:$0]  (!%p1390_p13), %s1388_s15, 640, %s1394_s18, %s1396_s19, %s1279_s20, %s1279_s20, %s1280_s26  }
  0x2c   : > { %p1085_p9 = scmp.ge.s32.totalorder %s1276_s24, 1  ;;  %p231_p1 = scmp.lt.s32.totalorder %s1276_s24, 3 }
  0x2e   : > { %p232_p3 = pnand %p1085_p9, %p231_p1 }
  0x2f   : > { %s1427_s28 = sand.u32 (!%p232_p3), 1, %s1268_s22  }
  0x30   : > { %235 = sbr.rel (%p232_p3) target bundleno = 1038 (0x40e), region = 44  ;;  %s238_s11 = scalar_lea.sflag (!%p232_p3), [#allocation3], %s1427_s28 }
  0x31   : > { %s1104_s29 = smul.u32 (!%p232_p3), 40, %s1427_s28 }
  0x33   : > { %s241_s13 = scalar_lea.vmem (!%p232_p3), [#allocation2], %s1104_s29 }
  0x37   : > { %1255 = dma.done.wait (%p1368_p6), %s238_s11, 640  }
  0x38   : > { %1257 = vsyncadd (%p1368_p6), %s238_s11, 4294966656  ;;  %v1435_v0 = vld [vmem:[%s241_s13 + $0x8] sm:$0xff]  ;;  %v1437_v1 = vld [vmem:[%s241_s13 + $0x1c] sm:$0xff]  ;;  %s1281_s15 = smov 127   ;;  %s1282_s7 = smov 126   ;;  %vm310_vm0 = vcmask 1039360  }
  0x39   : > { %v1439_v2 = vld [vmem:[%s241_s13] sm:$0xff]  ;;  %v1089_v3 = vcombine.high %v1435_v0, %v1437_v1  ;;  %v1443_v4 = vld [vmem:[%s241_s13 + $0x14] sm:$0xff]  ;;  %v1088_v7 = vcombine.low %v1435_v0, %v1437_v1  ;;  %s1283_s16 = smov 110   ;;  %s1284_s18 = smov 109   ;;  %vm325_vm1 = vcmask 1031168   ;;  %vm340_vm2 = vcmask 900096  }
  0x3a   : > { %v1087_v5 = vcombine.high %v1439_v2, %v1443_v4  ;;  %v1086_v6 = vcombine.low %v1439_v2, %v1443_v4  ;;  %v1173_v8 = vld [vmem:[%s241_s13 + $0x10] ss:$20 sps:$4 sm:$0xff]   ;;  %s1285_s19 = smov 108   ;;  %s1286_s10 = smov 92   ;;  %vm355_vm3 = vcmask 891904   ;;  %vm370_vm4 = vcmask 883712  }
  0x3b   : > { %306 = vrot.lane.b32.xlu1 %v1089_v3, %s1281_s15  ;;  %s1287_s12 = smov 91   ;;  %s1288_s14 = smov 90   ;;  %vm385_vm5 = vcmask 752640   ;;  %vm528_vm6 = vcmask 310272   ;;  %vm400_vm7 = vcmask 744448   ;;  %vm413_vm8 = vcmask 736256  }
  0x3c   : > { %302 = vrot.lane.b32.xlu0 %v1087_v5, %s1281_s15  ;;  %s1289_s17 = smov 38   ;;  %vm601_vm9 = vcmask 130048   ;;  %vm855_vm10 = vcmask 1043456   ;;  %s1106_s26 = smul.u32 768, %s1350_s25 }
  0x3d   : > { %s995_s20 = scalar_lea.sflag [#allocation4], %s1427_s28  ;;  %p1775_p11 = scmp.ne.s32.totalorder %s1772_s8, 0 }
  0x3e   : > { %s1719_s13 = scalar_lea.hbm %s1769_s6, %s1106_s26  ;;  %s1291_s25 = smov [#allocation5]  }
  0x3f   : > { %300 = vrot.lane.b32.xlu1 %v1086_v6, %s1281_s15 }
  0x40   : > { %304 = vrot.lane.b32.xlu0 %v1088_v7, %s1281_s15 }
  0x43   : > { %317 = vrot.lane.b32.xlu1 %v1087_v5, %s1282_s7 }
  0x44   : > { %308 = vrot.lane.b32.xlu0 %v1173_v8, %s1281_s15 }
  0x47   : > { %321 = vrot.lane.b32.xlu1 %v1089_v3, %s1282_s7 }
  0x48   : > { %319 = vrot.lane.b32.xlu0 %v1088_v7, %s1282_s7 }
  0x4b   : > { %323 = vrot.lane.b32.xlu1 %v1173_v8, %s1282_s7 }
  0x4c   : > { %315 = vrot.lane.b32.xlu0 %v1086_v6, %s1282_s7 }
  0x4f   : > { %334 = vrot.lane.b32.xlu1 %v1088_v7, %s1283_s16 }
  0x50   : > { %332 = vrot.lane.b32.xlu0 %v1087_v5, %s1283_s16 }
  0x53   : > { %330 = vrot.lane.b32.xlu1 %v1086_v6, %s1283_s16 }
  0x54   : > { %336 = vrot.lane.b32.xlu0 %v1089_v3, %s1283_s16 }
  0x57   : > { %347 = vrot.lane.b32.xlu1 %v1087_v5, %s1284_s18 }
  0x58   : > { %338 = vrot.lane.b32.xlu0 %v1173_v8, %s1283_s16 }
  0x5b   : > { %351 = vrot.lane.b32.xlu1 %v1089_v3, %s1284_s18 }
  0x5c   : > { %349 = vrot.lane.b32.xlu0 %v1088_v7, %s1284_s18 }
  0x5f   : > { %353 = vrot.lane.b32.xlu1 %v1173_v8, %s1284_s18 }
  0x60   : > { %345 = vrot.lane.b32.xlu0 %v1086_v6, %s1284_s18 }
  0x63   : > { %364 = vrot.lane.b32.xlu1 %v1088_v7, %s1285_s19 }
  0x64   : > { %362 = vrot.lane.b32.xlu0 %v1087_v5, %s1285_s19 }
  0x67   : > { %360 = vrot.lane.b32.xlu1 %v1086_v6, %s1285_s19 }
  0x68   : > { %366 = vrot.lane.b32.xlu0 %v1089_v3, %s1285_s19 }
  0x6b   : > { %377 = vrot.lane.b32.xlu1 %v1087_v5, %s1286_s10 }
  0x6c   : > { %368 = vrot.lane.b32.xlu0 %v1173_v8, %s1285_s19 }
  0x6f   : > { %381 = vrot.lane.b32.xlu1 %v1089_v3, %s1286_s10 }
  0x70   : > { %379 = vrot.lane.b32.xlu0 %v1088_v7, %s1286_s10 }
  0x73   : > { %383 = vrot.lane.b32.xlu1 %v1173_v8, %s1286_s10 }
  0x74   : > { %375 = vrot.lane.b32.xlu0 %v1086_v6, %s1286_s10 }
  0x77   : > { %394 = vrot.lane.b32.xlu1 %v1088_v7, %s1287_s12 }
  0x78   : > { %392 = vrot.lane.b32.xlu0 %v1087_v5, %s1287_s12 }
  0x7b   : > { %390 = vrot.lane.b32.xlu1 %v1086_v6, %s1287_s12 }
  0x7c   : > { %396 = vrot.lane.b32.xlu0 %v1089_v3, %s1287_s12 }
  0x7f   : > { %405 = vrot.lane.b32.xlu1 %v1087_v5, %s1288_s14 }
  0x80   : > { %398 = vrot.lane.b32.xlu0 %v1173_v8, %s1287_s12 }
  0x83   : > { %409 = vrot.lane.b32.xlu1 %v1089_v3, %s1288_s14 }
  0x84   : > { %407 = vrot.lane.b32.xlu0 %v1088_v7, %s1288_s14 }
  0x87   : > { %440 = vrot.lane.b32.xlu1 %v1087_v5, %s1289_s17 }
  0x88   : > { %411 = vrot.lane.b32.xlu0 %v1173_v8, %s1288_s14 }
  0x8b   : > { %438 = vrot.lane.b32.xlu1 %v1086_v6, %s1289_s17 }
  0x8c   : > { %442 = vrot.lane.b32.xlu0 %v1088_v7, %s1289_s17 }
  0x8f   : > { %446 = vrot.lane.b32.xlu1 %v1173_v8, %s1289_s17 }
  0x90   : > { %444 = vrot.lane.b32.xlu0 %v1089_v3, %s1289_s17 }
  0xad   : > { %v307_v9 = vpop.permute.xlu1 %306 }
  0xae   : > { %v303_v10 = vpop.permute.xlu0 %302 }
  0xb1   : > { %v301_v11 = vpop.permute.xlu1 %300 }
  0xb2   : > { %v305_v12 = vpop.permute.xlu0 %304  ;;  %v311_v30 = vsel %vm310_vm0, %v301_v11, %v303_v10 }
  0xb3   : > { %v312_v27 = vsel %vm310_vm0, %v303_v10, %v305_v12  ;;  %v313_v31 = vsel %vm310_vm0, %v305_v12, %v307_v9 }
  0xb5   : > { %v318_v13 = vpop.permute.xlu1 %317 }
  0xb6   : > { %v309_v14 = vpop.permute.xlu0 %308 }
  0xb7   : > { %456 = vrot.lane.b32.xlu0 %v309_v14, %s1289_s17  ;;  %v314_v35 = vsel %vm310_vm0, %v307_v9, %v309_v14 }
  0xb9   : > { %v322_v15 = vpop.permute.xlu1 %321 }
  0xba   : > { %v320_v16 = vpop.permute.xlu0 %319 }
  0xbb   : > { %v328_v33 = vsel %vm325_vm1, %v320_v16, %v322_v15  ;;  %v327_v39 = vsel %vm325_vm1, %v318_v13, %v320_v16 }
  0xbd   : > { %v324_v17 = vpop.permute.xlu1 %323 }
  0xbe   : > { %v316_v18 = vpop.permute.xlu0 %315  ;;  %466 = vrot.lane.b32.xlu1 %v324_v17, %s1289_s17  ;;  %v329_v37 = vsel %vm325_vm1, %v322_v15, %v324_v17 }
  0xbf   : > { %v326_v43 = vsel %vm325_vm1, %v316_v18, %v318_v13 }
  0xc1   : > { %v335_v19 = vpop.permute.xlu1 %334 }
  0xc2   : > { %v333_v20 = vpop.permute.xlu0 %332 }
  0xc3   : > { %v342_v41 = vsel %vm340_vm2, %v333_v20, %v335_v19 }
  0xc5   : > { %v331_v21 = vpop.permute.xlu1 %330 }
  0xc6   : > { %v337_v22 = vpop.permute.xlu0 %336  ;;  %v341_v45 = vsel %vm340_vm2, %v331_v21, %v333_v20 }
  0xc7   : > { %v343_v47 = vsel %vm340_vm2, %v335_v19, %v337_v22 }
  0xc9   : > { %v348_v23 = vpop.permute.xlu1 %347 }
  0xca   : > { %v339_v24 = vpop.permute.xlu0 %338 }
  0xcb   : > { %476 = vrot.lane.b32.xlu0 %v339_v24, %s1289_s17  ;;  %v344_v51 = vsel %vm340_vm2, %v337_v22, %v339_v24  ;;  %v1176_v24 = vld [vmem:[%s1764_s1 + $0x4] ss:$8 sps:$4 sm:$0xff]  }
  0xcc   : > { %1093 = vmatprep.mubr.msk.bf16.mxu0 %vm601_vm9, %v1176_v24  ;;  %1094 = vmatprep.mubr.msk.bf16.mxu1 %vm601_vm9, %v1176_v24 }
  0xcd   : > { %v352_v25 = vpop.permute.xlu1 %351 }
  0xce   : > { %v350_v26 = vpop.permute.xlu0 %349 }
  0xcf   : > { %450 = vrot.lane.b32.xlu0 %v312_v27, %s1289_s17  ;;  %v358_v49 = vsel %vm355_vm3, %v350_v26, %v352_v25  ;;  %v357_v56 = vsel %vm355_vm3, %v348_v23, %v350_v26 }
  0xd1   : > { %v354_v28 = vpop.permute.xlu1 %353 }
  0xd2   : > { %v346_v29 = vpop.permute.xlu0 %345  ;;  %486 = vrot.lane.b32.xlu1 %v354_v28, %s1289_s17  ;;  %v359_v53 = vsel %vm355_vm3, %v352_v25, %v354_v28 }
  0xd3   : > { %448 = vrot.lane.b32.xlu0 %v311_v30, %s1289_s17  ;;  %v356_v60 = vsel %vm355_vm3, %v346_v29, %v348_v23  ;;  %v1290_v29 = vmov 0   ;;  %v417_v30 = vld [vmem:[%s1765_s2] sm:$0xff] }
  0xd4   : > { %1168 = vset.pattern.permute.xlu1 %v1290_v29  ;;  %1167 = vset.pattern.permute.xlu0 %v1290_v29 }
  0xd5   : > { %v365_v32 = vpop.permute.xlu1 %364 }
  0xd6   : > { %452 = vrot.lane.b32.xlu1 %v313_v31, %s1289_s17  ;;  %v363_v34 = vpop.permute.xlu0 %362  ;;  %v418_v31 = vld [vmem:[%s1765_s2 + $0x8] sm:$0xff] }
  0xd7   : > { %462 = vrot.lane.b32.xlu0 %v328_v33, %s1289_s17  ;;  %v372_v55 = vsel %vm370_vm4, %v363_v34, %v365_v32 }
  0xd9   : > { %v361_v36 = vpop.permute.xlu1 %360 }
  0xda   : > { %454 = vrot.lane.b32.xlu1 %v314_v35, %s1289_s17  ;;  %v367_v38 = vpop.permute.xlu0 %366  ;;  %v371_v59 = vsel %vm370_vm4, %v361_v36, %v363_v34 }
  0xdb   : > { %464 = vrot.lane.b32.xlu0 %v329_v37, %s1289_s17  ;;  %v373_v63 = vsel %vm370_vm4, %v365_v32, %v367_v38 }
  0xdd   : > { %v378_v40 = vpop.permute.xlu1 %377 }
  0xde   : > { %460 = vrot.lane.b32.xlu1 %v327_v39, %s1289_s17  ;;  %v369_v42 = vpop.permute.xlu0 %368 }
  0xdf   : > { %470 = vrot.lane.b32.xlu0 %v342_v41, %s1289_s17  ;;  %v374_v7 = vsel %vm370_vm4, %v367_v38, %v369_v42 }
  0xe1   : > { %v382_v44 = vpop.permute.xlu1 %381 }
  0xe2   : > { %458 = vrot.lane.b32.xlu1 %v326_v43, %s1289_s17  ;;  %v380_v46 = vpop.permute.xlu0 %379 }
  0xe3   : > { %468 = vrot.lane.b32.xlu0 %v341_v45, %s1289_s17  ;;  %v388_v6 = vsel %vm385_vm5, %v380_v46, %v382_v44  ;;  %v387_v10 = vsel %vm385_vm5, %v378_v40, %v380_v46 }
  0xe5   : > { %v384_v48 = vpop.permute.xlu1 %383 }
  0xe6   : > { %472 = vrot.lane.b32.xlu1 %v343_v47, %s1289_s17  ;;  %v376_v50 = vpop.permute.xlu0 %375  ;;  %v389_v11 = vsel %vm385_vm5, %v382_v44, %v384_v48 }
  0xe7   : > { %482 = vrot.lane.b32.xlu0 %v358_v49, %s1289_s17  ;;  %v386_v17 = vsel %vm385_vm5, %v376_v50, %v378_v40 }
  0xe9   : > { %v395_v52 = vpop.permute.xlu1 %394 }
  0xea   : > { %474 = vrot.lane.b32.xlu1 %v344_v51, %s1289_s17  ;;  %v393_v54 = vpop.permute.xlu0 %392 }
  0xeb   : > { %484 = vrot.lane.b32.xlu0 %v359_v53, %s1289_s17  ;;  %v402_v16 = vsel %vm400_vm7, %v393_v54, %v395_v52 }
  0xed   : > { %v391_v57 = vpop.permute.xlu1 %390 }
  0xee   : > { %480 = vrot.lane.b32.xlu1 %v357_v56, %s1289_s17  ;;  %v397_v58 = vpop.permute.xlu0 %396  ;;  %v401_v22 = vsel %vm400_vm7, %v391_v57, %v393_v54 }
  0xef   : > { %490 = vrot.lane.b32.xlu0 %v372_v55, %s1289_s17  ;;  %v403_v23 = vsel %vm400_vm7, %v395_v52, %v397_v58 }
  0xf1   : > { %v406_v61 = vpop.permute.xlu1 %405 }
  0xf2   : > { %478 = vrot.lane.b32.xlu1 %v356_v60, %s1289_s17  ;;  %v399_v62 = vpop.permute.xlu0 %398 }
  0xf3   : > { %488 = vrot.lane.b32.xlu0 %v371_v59, %s1289_s17  ;;  %v404_v26 = vsel %vm400_vm7, %v397_v58, %v399_v62 }
  0xf5   : > { %v410_v3 = vpop.permute.xlu1 %409 }
  0xf6   : > { %492 = vrot.lane.b32.xlu1 %v373_v63, %s1289_s17  ;;  %v408_v5 = vpop.permute.xlu0 %407 }
  0xf7   : > { %496 = vrot.lane.b32.xlu0 %v369_v42, %s1289_s17  ;;  %v415_v25 = vsel %vm413_vm8, %v408_v5, %v410_v3  ;;  %v414_v27 = vsel %vm413_vm8, %v406_v61, %v408_v5 }
  0xf9   : > { %v441_v8 = vpop.permute.xlu1 %440 }
  0xfa   : > { %494 = vrot.lane.b32.xlu1 %v374_v7, %s1289_s17  ;;  %v412_v9 = vpop.permute.xlu0 %411 }
  0xfb   : > { %502 = vrot.lane.b32.xlu0 %v388_v6, %s1289_s17  ;;  %v416_v28 = vsel %vm413_vm8, %v410_v3, %v412_v9 }
  0xfd   : > { %v439_v12 = vpop.permute.xlu1 %438 }
  0xfe   : > { %500 = vrot.lane.b32.xlu1 %v387_v10, %s1289_s17  ;;  %v443_v13 = vpop.permute.xlu0 %442  ;;  %v529_v14 = vsel %vm528_vm6, %v439_v12, %v441_v8 }
  0xff   : > { %504 = vrot.lane.b32.xlu0 %v389_v11, %s1289_s17  ;;  %v530_v15 = vsel %vm528_vm6, %v441_v8, %v443_v13 }
 0x100   : > { %605 = vmatprep.subr.bf16.mxu0 %v530_v15 }
 0x101   : > { %606 = vmatpush1.bf16.msra.mxu0 %v529_v14  ;;  %v447_v19 = vpop.permute.xlu1 %446 }
 0x102   : > { %498 = vrot.lane.b32.xlu1 %v386_v17, %s1289_s17  ;;  %v445_v18 = vpop.permute.xlu0 %444 }
 0x103   : > { %510 = vrot.lane.b32.xlu0 %v402_v16, %s1289_s17  ;;  %v532_v20 = vsel %vm528_vm6, %v445_v18, %v447_v19  ;;  %v531_v21 = vsel %vm528_vm6, %v443_v13, %v445_v18 }
 0x104   : > { %648 = vmatprep.subr.bf16.mxu1 %v532_v20 }
 0x105   : > { %649 = vmatpush1.bf16.msra.mxu1 %v531_v21 }
 0x106   : > { %506 = vrot.lane.b32.xlu1 %v384_v48, %s1289_s17 }
 0x107   : > { %508 = vrot.lane.b32.xlu0 %v401_v22, %s1289_s17 }
 0x10a   : > { %512 = vrot.lane.b32.xlu1 %v403_v23, %s1289_s17 }
 0x10b   : > { %516 = vrot.lane.b32.xlu0 %v399_v62, %s1289_s17 }
 0x10e   : > { %514 = vrot.lane.b32.xlu1 %v404_v26, %s1289_s17 }
 0x10f   : > { %522 = vrot.lane.b32.xlu0 %v415_v25, %s1289_s17 }
 0x112   : > { %520 = vrot.lane.b32.xlu1 %v414_v27, %s1289_s17 }
 0x113   : > { %524 = vrot.lane.b32.xlu0 %v416_v28, %s1289_s17 }
 0x116   : > { %518 = vrot.lane.b32.xlu1 %v406_v61, %s1289_s17 }
 0x117   : > { %421 = vperm.xlu0 %1167, %v417_v30  }
 0x11a   : > { %526 = vrot.lane.b32.xlu1 %v412_v9, %s1289_s17 }
 0x11e   : > { %426 = vperm.xlu1 %1168, %v418_v31  }
 0x129   : > { %v457_v32 = vpop.permute.xlu0 %456 }
 0x130   : > { %v467_v34 = vpop.permute.xlu1 %466 }
 0x13d   : > { %v477_v33 = vpop.permute.xlu0 %476 }
 0x141   : > { %v451_v35 = vpop.permute.xlu0 %450 }
 0x144   : > { %v487_v36 = vpop.permute.xlu1 %486 }
 0x145   : > { %v449_v37 = vpop.permute.xlu0 %448 }
 0x146   : > { %v533_v41 = vsel %vm528_vm6, %v449_v37, %v451_v35 }
 0x148   : > { %v453_v38 = vpop.permute.xlu1 %452 }
 0x149   : > { %v463_v39 = vpop.permute.xlu0 %462  ;;  %v534_v40 = vsel %vm528_vm6, %v451_v35, %v453_v38 }
 0x14a   : > { %607 = vmatprep.subr.bf16.mxu0 %v534_v40 }
 0x14b   : > { %608 = vmatpush1.bf16.msra.mxu0 %v533_v41  ;;  %v1174_v41 = vld [vmem:[%s1764_s1] ss:$8 sps:$4 sm:$0xff]  }
 0x14c   : > { %v455_v42 = vpop.permute.xlu1 %454 }
 0x14d   : > { %v465_v43 = vpop.permute.xlu0 %464  ;;  %v536_v44 = vsel %vm528_vm6, %v455_v42, %v457_v32  ;;  %v535_v45 = vsel %vm528_vm6, %v453_v38, %v455_v42 }
 0x14e   : > { %650 = vmatprep.subr.bf16.mxu1 %v536_v44  ;;  %v540_v46 = vsel %vm528_vm6, %v465_v43, %v467_v34  ;;  %v539_v50 = vsel %vm528_vm6, %v463_v39, %v465_v43 }
 0x14f   : > { %651 = vmatpush1.bf16.msra.mxu1 %v535_v45 }
 0x150   : > { %652 = vmatprep.subr.bf16.mxu1 %v540_v46  ;;  %v461_v47 = vpop.permute.xlu1 %460  ;;  %v701_v46 = vlaneseq }
 0x151   : > { %v471_v48 = vpop.permute.xlu0 %470  ;;  %v538_v49 = vsel %vm528_vm6, %v461_v47, %v463_v39 }
 0x152   : > { %609 = vmatprep.subr.bf16.mxu0 %v538_v49  ;;  %v699_v49 = vld [vmem:[%s1768_s5] sm:$0xf] }
 0x153   : > { %653 = vmatpush1.bf16.msra.mxu1 %v539_v50 }
 0x154   : > { %v459_v51 = vpop.permute.xlu1 %458 }
 0x155   : > { %v469_v52 = vpop.permute.xlu0 %468  ;;  %v537_v53 = vsel %vm528_vm6, %v459_v51, %v461_v47  ;;  %v702_v47 = vshrl.u32 %v701_v46, 7 }
 0x156   : > { %610 = vmatpush1.bf16.msra.mxu0 %v537_v53  ;;  %v541_v57 = vsel %vm528_vm6, %v469_v52, %v471_v48 }
 0x157   : > { %v707_v51 = vsub.s32 1, %v702_v47 }
 0x158   : > { %v473_v54 = vpop.permute.xlu1 %472 }
 0x159   : > { %v483_v55 = vpop.permute.xlu0 %482  ;;  %v542_v56 = vsel %vm528_vm6, %v471_v48, %v473_v54  ;;  %v703_v48 = vsub.s32 0, %v702_v47 }
 0x15a   : > { %611 = vmatprep.subr.bf16.mxu0 %v542_v56 }
 0x15b   : > { %612 = vmatpush1.bf16.msra.mxu0 %v541_v57 }
 0x15c   : > { %v475_v58 = vpop.permute.xlu1 %474 }
 0x15d   : > { %v485_v59 = vpop.permute.xlu0 %484  ;;  %v544_v60 = vsel %vm528_vm6, %v475_v58, %v477_v33  ;;  %v543_v61 = vsel %vm528_vm6, %v473_v54, %v475_v58 }
 0x15e   : > { %654 = vmatprep.subr.bf16.mxu1 %v544_v60  ;;  %v548_v62 = vsel %vm528_vm6, %v485_v59, %v487_v36  ;;  %v547_v6 = vsel %vm528_vm6, %v483_v55, %v485_v59  ;;  %v708_v59 = vrot.slane %v699_v49, %v707_v51 }
 0x15f   : > { %655 = vmatpush1.bf16.msra.mxu1 %v543_v61 }
 0x160   : > { %656 = vmatprep.subr.bf16.mxu1 %v548_v62  ;;  %v481_v63 = vpop.permute.xlu1 %480 }
 0x161   : > { %v491_v3 = vpop.permute.xlu0 %490  ;;  %v546_v5 = vsel %vm528_vm6, %v481_v63, %v483_v55  ;;  %v704_v55 = vrot.slane %v699_v49, %v703_v48 }
 0x162   : > { %613 = vmatprep.subr.bf16.mxu0 %v546_v5  ;;  %v711_v5 = vsub.s32 2, %v702_v47 }
 0x163   : > { %657 = vmatpush1.bf16.msra.mxu1 %v547_v6 }
 0x164   : > { %v479_v7 = vpop.permute.xlu1 %478 }
 0x165   : > { %v489_v8 = vpop.permute.xlu0 %488  ;;  %v545_v9 = vsel %vm528_vm6, %v479_v7, %v481_v63 }
 0x166   : > { %614 = vmatpush1.bf16.msra.mxu0 %v545_v9  ;;  %v549_v13 = vsel %vm528_vm6, %v489_v8, %v491_v3  ;;  %v715_v9 = vsub.s32 3, %v702_v47 }
 0x168   : > { %v493_v10 = vpop.permute.xlu1 %492 }
 0x169   : > { %v497_v11 = vpop.permute.xlu0 %496  ;;  %v550_v12 = vsel %vm528_vm6, %v491_v3, %v493_v10 }
 0x16a   : > { %615 = vmatprep.subr.bf16.mxu0 %v550_v12 }
 0x16b   : > { %616 = vmatpush1.bf16.msra.mxu0 %v549_v13 }
 0x16c   : > { %v495_v14 = vpop.permute.xlu1 %494 }
 0x16d   : > { %v503_v15 = vpop.permute.xlu0 %502  ;;  %v552_v16 = vsel %vm528_vm6, %v495_v14, %v497_v11  ;;  %v551_v17 = vsel %vm528_vm6, %v493_v10, %v495_v14 }
 0x16e   : > { %658 = vmatprep.subr.bf16.mxu1 %v552_v16 }
 0x16f   : > { %659 = vmatpush1.bf16.msra.mxu1 %v551_v17 }
 0x170   : > { %v501_v18 = vpop.permute.xlu1 %500 }
 0x171   : > { %v505_v19 = vpop.permute.xlu0 %504  ;;  %v554_v20 = vsel %vm528_vm6, %v501_v18, %v503_v15 }
 0x172   : > { %617 = vmatprep.subr.bf16.mxu0 %v554_v20  ;;  %v555_v27 = vsel %vm528_vm6, %v503_v15, %v505_v19 }
 0x174   : > { %v499_v21 = vpop.permute.xlu1 %498 }
 0x175   : > { %v511_v22 = vpop.permute.xlu0 %510  ;;  %v553_v23 = vsel %vm528_vm6, %v499_v21, %v501_v18 }
 0x176   : > { %618 = vmatpush1.bf16.msra.mxu0 %v553_v23 }
 0x178   : > { %v507_v24 = vpop.permute.xlu1 %506 }
 0x179   : > { %v509_v25 = vpop.permute.xlu0 %508  ;;  %v556_v26 = vsel %vm528_vm6, %v505_v19, %v507_v24  ;;  %v712_v19 = vrot.slane %v699_v49, %v711_v5  ;;  %v716_v24 = vrot.slane %v699_v49, %v715_v9 }
 0x17a   : > { %660 = vmatprep.subr.bf16.mxu1 %v556_v26  ;;  %v557_v32 = vsel %vm528_vm6, %v509_v25, %v511_v22 }
 0x17b   : > { %661 = vmatpush1.bf16.msra.mxu1 %v555_v27 }
 0x17c   : > { %v513_v28 = vpop.permute.xlu1 %512 }
 0x17d   : > { %v558_v30 = vsel %vm528_vm6, %v511_v22, %v513_v28  ;;  %v517_v31 = vpop.permute.xlu0 %516 }
 0x17e   : > { %619 = vmatprep.subr.bf16.mxu0 %v558_v30 }
 0x17f   : > { %620 = vmatpush1.bf16.msra.mxu0 %v557_v32 }
 0x180   : > { %v515_v33 = vpop.permute.xlu1 %514 }
 0x181   : > { %v560_v34 = vsel %vm528_vm6, %v515_v33, %v517_v31  ;;  %v559_v35 = vsel %vm528_vm6, %v513_v28, %v515_v33  ;;  %v523_v36 = vpop.permute.xlu0 %522 }
 0x182   : > { %662 = vmatprep.subr.bf16.mxu1 %v560_v34 }
 0x183   : > { %663 = vmatpush1.bf16.msra.mxu1 %v559_v35 }
 0x184   : > { %v521_v37 = vpop.permute.xlu1 %520 }
 0x185   : > { %v562_v38 = vsel %vm528_vm6, %v521_v37, %v523_v36  ;;  %v525_v42 = vpop.permute.xlu0 %524 }
 0x186   : > { %621 = vmatprep.subr.bf16.mxu0 %v562_v38  ;;  %v563_v45 = vsel %vm528_vm6, %v523_v36, %v525_v42  ;;  %v1177_v36 = vld [vmem:[%s1766_s3 + $0x4] ss:$8 sps:$4 sm:$0xff]  }
 0x187   : > { %v869_v38 = vld [vmem:[%s1767_s4 + $0x8] sm:$0xff] }
 0x188   : > { %v519_v39 = vpop.permute.xlu1 %518 }
 0x189   : > { %v561_v40 = vsel %vm528_vm6, %v519_v39, %v521_v37  ;;  %v868_v37 = vld [vmem:[%s1767_s4] sm:$0xff] }
 0x18a   : > { %622 = vmatpush1.bf16.msra.mxu0 %v561_v40 }
 0x18c   : > { %v527_v43 = vpop.permute.xlu1 %526 }
 0x18d   : > { %638 = vmatmul.mubr.bf16.vlgmr.msra.gmra.mrb[0].mxu0 %v1174_v41  ;;  %v564_v44 = vsel %vm528_vm6, %v525_v42, %v527_v43 }
 0x18e   : > { %664 = vmatprep.subr.bf16.mxu1 %v564_v44  ;;  %1097 = vmatprep.mubr.msk.bf16.mxu0 %vm601_vm9, %v1177_v36 }
 0x18f   : > { %665 = vmatpush1.bf16.msra.mxu1 %v563_v45 }
 0x190   : > { %935 = vmatprep.subr.bf16.mxu1 %v1290_v29 }
 0x192   : > { %681 = vmatmul.mubr.bf16.vlgmr.msra.gmra.mrb[0].mxu1 %v1174_v41 }
 0x193   : > { %1098 = vmatprep.mubr.msk.bf16.mxu1 %vm601_vm9, %v1177_v36 }
 0x196   : > { %v422_v50 = vpop.permute.xlu0 %421 }
 0x19d   : > { %v427_v53 = vpop.permute.xlu1 %426 }
 0x260   : > { %v639_v52 = vpop.f32.mrb[0].mxu0 }
 0x261   : > { %v641_v54 = vpop.f32.mrb[1].mxu0  ;;  %v640_v56 = vadd.f32 %v639_v52, %v422_v50 }
 0x262   : > { %v642_v57 = vadd.f32 %v641_v54, %v422_v50  ;;  %v643_v58 = vpop.f32.mrb[2].mxu0 }
 0x263   : > { %v691_v60 = vmax.f32 %v640_v56, 0.0  ;;  %v644_v61 = vadd.f32 %v643_v58, %v427_v53  ;;  %v645_v62 = vpop.f32.mrb[3].mxu0 }
 0x264   : > { %v692_v63 = vmax.f32 %v642_v57, 0.0  ;;  %v646_v3 = vadd.f32 %v645_v62, %v427_v53 }
 0x265   : > { %v721_v6 = vmul.f32 %v704_v55, %v691_v60  ;;  %v695_v7 = vmax.f32 %v644_v61, 0.0  ;;  %v682_v8 = vpop.f32.mrb[0].mxu1 }
 0x266   : > { %v696_v10 = vmax.f32 %v646_v3, 0.0  ;;  %v722_v11 = vmul.f32 %v708_v59, %v692_v63  ;;  %v683_v12 = vadd.f32 %v682_v8, %v422_v50  ;;  %v684_v13 = vpop.f32.mrb[1].mxu1 }
 0x267   : > { %v725_v14 = vmul.f32 %v704_v55, %v695_v7  ;;  %v685_v15 = vadd.f32 %v684_v13, %v422_v50  ;;  %v686_v16 = vpop.f32.mrb[2].mxu1 }
 0x268   : > { %v726_v17 = vmul.f32 %v708_v59, %v696_v10  ;;  %v693_v18 = vmax.f32 %v683_v12, 0.0  ;;  %v687_v20 = vadd.f32 %v686_v16, %v427_v53  ;;  %v688_v21 = vpop.f32.mrb[3].mxu1 }
 0x269   : > { %v729_v22 = vpack.c.bf16 %v725_v14, %v721_v6  ;;  %v694_v23 = vmax.f32 %v685_v15, 0.0  ;;  %v689_v25 = vadd.f32 %v688_v21, %v427_v53 }
 0x26a   : > { %v730_v26 = vpack.c.bf16 %v726_v17, %v722_v11  ;;  %v697_v27 = vmax.f32 %v687_v20, 0.0  ;;  %v723_v30 = vmul.f32 %v712_v19, %v693_v18 }
 0x26b   : > { %v698_v28 = vmax.f32 %v689_v25, 0.0  ;;  %739 = vrot.lane.b32.xlu1 %v729_v22, %s1281_s15  ;;  %v724_v32 = vmul.f32 %v716_v24, %v694_v23 }
 0x26c   : > { %v727_v31 = vmul.f32 %v712_v19, %v697_v27  ;;  %892 = vmatprep.subr.bf16.mxu0 %v730_v26 }
 0x26d   : > { %v728_v33 = vmul.f32 %v716_v24, %v698_v28  ;;  %893 = vmatpush1.bf16.msra.mxu0 %v729_v22 }
 0x26e   : > { %v731_v34 = vpack.c.bf16 %v727_v31, %v723_v30 }
 0x26f   : > { %v732_v35 = vpack.c.bf16 %v728_v33, %v724_v32  ;;  %753 = vrot.lane.b32.xlu1 %v729_v22, %s1282_s7  ;;  %v1179_v33 = vld [vmem:[%s1766_s3] ss:$8 sps:$4 sm:$0xff]  }
 0x270   : > { %743 = vrot.lane.b32.xlu0 %v731_v34, %s1281_s15  ;;  %936 = vmatpush1.bf16.msra.mxu1 %v731_v34 }
 0x271   : > { %937 = vmatprep.subr.bf16.mxu1 %v1290_v29 }
 0x273   : > { %767 = vrot.lane.b32.xlu1 %v729_v22, %s1283_s16 }
 0x274   : > { %757 = vrot.lane.b32.xlu0 %v731_v34, %s1282_s7 }
 0x277   : > { %781 = vrot.lane.b32.xlu1 %v729_v22, %s1284_s18 }
 0x278   : > { %771 = vrot.lane.b32.xlu0 %v731_v34, %s1283_s16 }
 0x27b   : > { %795 = vrot.lane.b32.xlu1 %v729_v22, %s1285_s19 }
 0x27c   : > { %785 = vrot.lane.b32.xlu0 %v731_v34, %s1284_s18 }
 0x27f   : > { %809 = vrot.lane.b32.xlu1 %v729_v22, %s1286_s10 }
 0x280   : > { %799 = vrot.lane.b32.xlu0 %v731_v34, %s1285_s19 }
 0x283   : > { %823 = vrot.lane.b32.xlu1 %v729_v22, %s1287_s12 }
 0x284   : > { %813 = vrot.lane.b32.xlu0 %v731_v34, %s1286_s10 }
 0x287   : > { %741 = vrot.lane.b32.xlu1 %v730_v26, %s1281_s15 }
 0x288   : > { %827 = vrot.lane.b32.xlu0 %v731_v34, %s1287_s12 }
 0x28b   : > { %755 = vrot.lane.b32.xlu1 %v730_v26, %s1282_s7 }
 0x28c   : > { %841 = vrot.lane.b32.xlu0 %v731_v34, %s1288_s14 }
 0x28f   : > { %769 = vrot.lane.b32.xlu1 %v730_v26, %s1283_s16 }
 0x290   : > { %745 = vrot.lane.b32.xlu0 %v732_v35, %s1281_s15 }
 0x293   : > { %783 = vrot.lane.b32.xlu1 %v730_v26, %s1284_s18 }
 0x294   : > { %759 = vrot.lane.b32.xlu0 %v732_v35, %s1282_s7  ;;  %s1214_s7 = sshll.u32 %s1291_s25, 4  ;;  %s1215_s7 = int_to_ptr.vmem [resolvable:$false] %s1214_s7 }
 0x297   : > { %797 = vrot.lane.b32.xlu1 %v730_v26, %s1285_s19 }
 0x298   : > { %773 = vrot.lane.b32.xlu0 %v732_v35, %s1283_s16  ;;  %s1216_s16 = scalar_lea.vmem %s1215_s7, 1536 }
 0x29b   : > { %811 = vrot.lane.b32.xlu1 %v730_v26, %s1286_s10 }
 0x29c   : > { %787 = vrot.lane.b32.xlu0 %v732_v35, %s1284_s18 }
 0x29f   : > { %825 = vrot.lane.b32.xlu1 %v730_v26, %s1287_s12 }
 0x2a0   : > { %801 = vrot.lane.b32.xlu0 %v732_v35, %s1285_s19 }
 0x2a3   : > { %839 = vrot.lane.b32.xlu1 %v730_v26, %s1288_s14 }
 0x2a4   : > { %815 = vrot.lane.b32.xlu0 %v732_v35, %s1286_s10 }
 0x2a7   : > { %837 = vrot.lane.b32.xlu1 %v729_v22, %s1288_s14 }
 0x2a8   : > { %829 = vrot.lane.b32.xlu0 %v732_v35, %s1287_s12  ;;  %s1105_s12 = smul.u32 48, %s1427_s28 }
 0x2ab   : > { %872 = vperm.xlu1 %1168, %v868_v37   ;;  %v851_v37 = vrot.slane %v1439_v2, 4 }
 0x2ac   : > { %843 = vrot.lane.b32.xlu0 %v732_v35, %s1288_s14  ;;  %s269_s14 = scalar_lea.vmem [#allocation5], %s1105_s12 }
 0x2ad   : > { %s1008_s17 = sshll.u32 %s269_s14, 4  ;;  %s1714_s17 = int_to_ptr.vmem [resolvable:$true] %s1008_s17 }
 0x2ae   : > { %s1210_s15 = scalar_lea.vmem %s1714_s17, 768  ;;  %p1217_p8 = scmp.lt.s32.totalorder %s1714_s17, %s1215_s7 }
 0x2af   : > { %p1211_p6 = scmp.ne.s32.totalorder %s1714_s17, %s1210_s15  ;;  %p1218_p10 = scmp.lt.s32.totalorder %s1216_s16, %s1210_s15 }
 0x2b0   : > { %877 = vperm.xlu0 %1167, %v869_v38   ;;  %v852_v38 = vrot.slane %v1435_v0, 4 }
 0x2b1   : > { %p1212_p12 = pnand %p1211_p6, %p1775_p11  ;;  %p1219_p0 = por %p1218_p10, %p1217_p8 }
 0x2b3   : > { %p1213_p13 = pneg %p1212_p12 }
 0x2b5   : > { %p1220_p2 = pnand %p1219_p0, %p1213_p13 }
 0x2dd   : > { %v740_v39 = vpop.permute.xlu1 %739 }
 0x2e1   : > { %v754_v40 = vpop.permute.xlu1 %753 }
 0x2e2   : > { %v744_v41 = vpop.permute.xlu0 %743 }
 0x2e5   : > { %v768_v42 = vpop.permute.xlu1 %767 }
 0x2e6   : > { %v758_v43 = vpop.permute.xlu0 %757 }
 0x2e9   : > { %v782_v44 = vpop.permute.xlu1 %781 }
 0x2ea   : > { %v772_v45 = vpop.permute.xlu0 %771 }
 0x2ed   : > { %v796_v46 = vpop.permute.xlu1 %795 }
 0x2ee   : > { %v786_v47 = vpop.permute.xlu0 %785 }
 0x2f1   : > { %v810_v48 = vpop.permute.xlu1 %809 }
 0x2f2   : > { %v800_v49 = vpop.permute.xlu0 %799 }
 0x2f5   : > { %v824_v50 = vpop.permute.xlu1 %823 }
 0x2f6   : > { %v814_v51 = vpop.permute.xlu0 %813 }
 0x2f9   : > { %v742_v52 = vpop.permute.xlu1 %741 }
 0x2fa   : > { %v747_v53 = vsel %vm310_vm0, %v740_v39, %v742_v52  ;;  %v1667_v54 = vpop.permute.xlu0 %827  ;;  %v748_v55 = vsel %vm310_vm0, %v742_v52, %v744_v41  ;;  %v853_v39 = vrot.slane %v1443_v4, 4 }
 0x2fb   : > { %894 = vmatprep.subr.bf16.mxu0 %v748_v55 }
 0x2fc   : > { %895 = vmatpush1.bf16.msra.mxu0 %v747_v53 }
 0x2fd   : > { %v756_v56 = vpop.permute.xlu1 %755 }
 0x2fe   : > { %v761_v57 = vsel %vm325_vm1, %v754_v40, %v756_v56  ;;  %v1671_v58 = vpop.permute.xlu0 %841  ;;  %v762_v59 = vsel %vm325_vm1, %v756_v56, %v758_v43  ;;  %v854_v40 = vrot.slane %v1437_v1, 4  ;;  %v864_v1 = vunpack.c.l.bf16 %v852_v38 }
 0x2ff   : > { %896 = vmatprep.subr.bf16.mxu0 %v762_v59 }
 0x300   : > { %897 = vmatpush1.bf16.msra.mxu0 %v761_v57 }
 0x301   : > { %v770_v60 = vpop.permute.xlu1 %769 }
 0x302   : > { %v775_v61 = vsel %vm340_vm2, %v768_v42, %v770_v60  ;;  %v746_v62 = vpop.permute.xlu0 %745  ;;  %v776_v63 = vsel %vm340_vm2, %v770_v60, %v772_v45  ;;  %v857_v42 = vsel %vm855_vm10, %v853_v39, %v854_v40 }
 0x303   : > { %v749_v3 = vsel %vm310_vm0, %v744_v41, %v746_v62  ;;  %898 = vmatprep.subr.bf16.mxu0 %v776_v63  ;;  %v856_v41 = vsel %vm855_vm10, %v851_v37, %v852_v38  ;;  %v867_v62 = vunpack.c.l.bf16 %v854_v40 }
 0x304   : > { %899 = vmatpush1.bf16.msra.mxu0 %v775_v61  ;;  %938 = vmatpush1.bf16.msra.mxu1 %v749_v3 }
 0x305   : > { %v784_v5 = vpop.permute.xlu1 %783  ;;  %939 = vmatprep.subr.bf16.mxu1 %v1290_v29 }
 0x306   : > { %v789_v6 = vsel %vm355_vm3, %v782_v44, %v784_v5  ;;  %v760_v7 = vpop.permute.xlu0 %759  ;;  %v790_v8 = vsel %vm355_vm3, %v784_v5, %v786_v47 }
 0x307   : > { %v763_v9 = vsel %vm325_vm1, %v758_v43, %v760_v7  ;;  %900 = vmatprep.subr.bf16.mxu0 %v790_v8  ;;  %v862_v43 = vunpack.c.l.bf16 %v856_v41 }
 0x308   : > { %901 = vmatpush1.bf16.msra.mxu0 %v789_v6  ;;  %940 = vmatpush1.bf16.msra.mxu1 %v763_v9 }
 0x309   : > { %v798_v10 = vpop.permute.xlu1 %797  ;;  %941 = vmatprep.subr.bf16.mxu1 %v1290_v29 }
 0x30a   : > { %v803_v11 = vsel %vm370_vm4, %v796_v46, %v798_v10  ;;  %v774_v12 = vpop.permute.xlu0 %773  ;;  %v804_v13 = vsel %vm370_vm4, %v798_v10, %v800_v49 }
 0x30b   : > { %v777_v14 = vsel %vm340_vm2, %v772_v45, %v774_v12  ;;  %902 = vmatprep.subr.bf16.mxu0 %v804_v13  ;;  %v863_v45 = vunpack.c.h.bf16 %v856_v41 }
 0x30c   : > { %903 = vmatpush1.bf16.msra.mxu0 %v803_v11  ;;  %942 = vmatpush1.bf16.msra.mxu1 %v777_v14 }
 0x30d   : > { %v812_v15 = vpop.permute.xlu1 %811  ;;  %943 = vmatprep.subr.bf16.mxu1 %v1290_v29 }
 0x30e   : > { %v817_v16 = vsel %vm385_vm5, %v810_v48, %v812_v15  ;;  %v788_v17 = vpop.permute.xlu0 %787  ;;  %v818_v18 = vsel %vm385_vm5, %v812_v15, %v814_v51  ;;  %v865_v48 = vunpack.c.l.bf16 %v857_v42 }
 0x30f   : > { %v791_v19 = vsel %vm355_vm3, %v786_v47, %v788_v17  ;;  %904 = vmatprep.subr.bf16.mxu0 %v818_v18 }
 0x310   : > { %905 = vmatpush1.bf16.msra.mxu0 %v817_v16  ;;  %944 = vmatpush1.bf16.msra.mxu1 %v791_v19 }
 0x311   : > { %v826_v20 = vpop.permute.xlu1 %825  ;;  %945 = vmatprep.subr.bf16.mxu1 %v1290_v29 }
 0x312   : > { %v831_v21 = vsel %vm400_vm7, %v824_v50, %v826_v20  ;;  %v802_v22 = vpop.permute.xlu0 %801  ;;  %v832_v23 = vsel %vm400_vm7, %v826_v20, %v1667_v54 }
 0x313   : > { %v805_v24 = vsel %vm370_vm4, %v800_v49, %v802_v22  ;;  %906 = vmatprep.subr.bf16.mxu0 %v832_v23 }
 0x314   : > { %907 = vmatpush1.bf16.msra.mxu0 %v831_v21  ;;  %946 = vmatpush1.bf16.msra.mxu1 %v805_v24 }
 0x315   : > { %v840_v25 = vpop.permute.xlu1 %839  ;;  %947 = vmatprep.subr.bf16.mxu1 %v1290_v29 }
 0x316   : > { %v816_v26 = vpop.permute.xlu0 %815  ;;  %v846_v27 = vsel %vm413_vm8, %v840_v25, %v1671_v58 }
 0x317   : > { %v819_v28 = vsel %vm385_vm5, %v814_v51, %v816_v26  ;;  %908 = vmatprep.subr.bf16.mxu0 %v846_v27  ;;  %v866_v51 = vunpack.c.h.bf16 %v857_v42 }
 0x318   : > { %948 = vmatpush1.bf16.msra.mxu1 %v819_v28 }
 0x319   : > { %v838_v30 = vpop.permute.xlu1 %837  ;;  %949 = vmatprep.subr.bf16.mxu1 %v1290_v29 }
 0x31a   : > { %v845_v31 = vsel %vm413_vm8, %v838_v30, %v840_v25  ;;  %v830_v32 = vpop.permute.xlu0 %829 }
 0x31b   : > { %v833_v34 = vsel %vm400_vm7, %v1667_v54, %v830_v32  ;;  %909 = vmatpush1.bf16.msra.mxu0 %v845_v31 }
 0x31c   : > { %950 = vmatpush1.bf16.msra.mxu1 %v833_v34 }
 0x31d   : > { %951 = vmatprep.subr.bf16.mxu1 %v1290_v29 }
 0x31e   : > { %v844_v35 = vpop.permute.xlu0 %843  ;;  %925 = vmatmul.mubr.bf16.vlgmr.msra.gmra.mrb[4].mxu0 %v1179_v33 }
 0x31f   : > { %v847_v36 = vsel %vm413_vm8, %v1671_v58, %v844_v35 }
 0x320   : > { %952 = vmatpush1.bf16.msra.mxu1 %v847_v36 }
 0x323   : > { %968 = vmatmul.mubr.bf16.vlgmr.msra.gmra.mrb[4].mxu1 %v1179_v33 }
 0x32a   : > { %v873_v29 = vpop.permute.xlu1 %872 }
 0x32f   : > { %v878_v49 = vpop.permute.xlu0 %877 }
 0x3f1   : > { %v926_v44 = vpop.f32.mrb[4].mxu0 }
 0x3f2   : > { %v927_v46 = vadd.f32 %v926_v44, %v873_v29  ;;  %v928_v47 = vpop.f32.mrb[5].mxu0 }
 0x3f3   : > { %v929_v50 = vadd.f32 %v928_v47, %v873_v29  ;;  %v930_v2 = vpop.f32.mrb[6].mxu0 }
 0x3f4   : > { %v976_v0 = vadd.f32 %v927_v46, %v862_v43  ;;  %v931_v52 = vadd.f32 %v930_v2, %v878_v49  ;;  %v932_v53 = vpop.f32.mrb[7].mxu0 }
 0x3f5   : > { %v977_v4 = vadd.f32 %v929_v50, %v863_v45  ;;  %v933_v54 = vadd.f32 %v932_v53, %v878_v49 }
 0x3f6   : > { %v982_v55 = vmax.f32 %v976_v0, 0.0  ;;  %v979_v56 = vadd.f32 %v931_v52, %v865_v48  ;;  %v969_v57 = vpop.f32.mrb[4].mxu1 }
 0x3f7   : > { %v983_v58 = vmax.f32 %v977_v4, 0.0  ;;  %v980_v59 = vadd.f32 %v933_v54, %v866_v51  ;;  %v970_v60 = vadd.f32 %v969_v57, %v873_v29  ;;  %v971_v61 = vpop.f32.mrb[5].mxu1 }
 0x3f8   : > { %988 = vst [vmem:[%s269_s14] sm:$0xff] %v982_v55  ;;  %v985_v63 = vmax.f32 %v979_v56, 0.0  ;;  %v972_v3 = vpop.f32.mrb[6].mxu1 }
 0x3f9   : > { %989 = vst [vmem:[%s269_s14 + $0x8] sm:$0xff] %v983_v58  ;;  %v986_v5 = vmax.f32 %v980_v59, 0.0  ;;  %v978_v6 = vadd.f32 %v970_v60, %v864_v1  ;;  %v973_v7 = vadd.f32 %v972_v3, %v878_v49  ;;  %v974_v8 = vpop.f32.mrb[7].mxu1 }
 0x3fa   : > { %991 = vst [vmem:[%s269_s14 + $0x18] sm:$0xff] %v985_v63 }
 0x3fb   : > { %992 = vst [vmem:[%s269_s14 + $0x20] sm:$0xff] %v986_v5  ;;  %v984_v9 = vmax.f32 %v978_v6, 0.0  ;;  %v981_v10 = vadd.f32 %v973_v7, %v867_v62 }
 0x3fd   : > { %990 = vst [vmem:[%s269_s14 + $0x10] sm:$0xff] %v984_v9  ;;  %v987_v11 = vmax.f32 %v981_v10, 0.0 }
 0x3ff   : > { %993 = vst [vmem:[%s269_s14 + $0x28] sm:$0xff] %v987_v11 }
 0x400   : > { %1223 = shalt.err (!%p1220_p2)
}
 0x401   : > { %s1224_s18 = scalar_lea.hbm %s1719_s13, 768  ;;  %s1228_s12 = scalar_lea.hbm %s1769_s6, 1536 }
 0x402   : > { %p1225_p4 = scmp.ne.s32.totalorder %s1719_s13, %s1224_s18  ;;  %p1229_p9 = scmp.lt.u32.totalorder %s1719_s13, %s1769_s6 }
 0x403   : > { %p1230_p1 = scmp.lt.u32.totalorder %s1228_s12, %s1224_s18  ;;  %p1232_p6 = scmp.lt.u32.totalorder %s1224_s18, %s1719_s13 }
 0x404   : > { %p1226_p5 = pnand %p1225_p4, %p1775_p11 }
 0x405   : > { %p1231_p3 = por %p1230_p1, %p1229_p9 }
 0x406   : > { %p1227_p7 = pneg %p1226_p5 }
 0x407   : > { %p1233_p12 = por %p1232_p6, %p1231_p3 }
 0x409   : > { %p1234_p13 = pnand %p1233_p12, %p1227_p7 }
 0x40b   : > { %1237 = shalt.err (!%p1234_p13)
}
 0x40c   : > { %s1292_s29 = smov 384   ;;  %s1293_s11 = smov 24  }
 0x40d   : > { %1109 = dma.vmem_to_hbm [thread:$0]  (%p1775_p11), %s1714_s17, 768, %s1719_s13, %s995_s20, %s1292_s29, %s1292_s29, %s1293_s11  }
 0x40e PF: > { %s1023_s15 = sand.u32 1, %s1264_s21   ;;  %p1776_p8 = scmp.ne.s32.totalorder %s1773_s9, 0 }
 0x40f   : > { %p1777_p10 = scmp.ge.s32.totalorder %s1276_s24, 2  ;;  %s1024_s25 = scalar_lea.sflag [#allocation4], %s1023_s15 }
 0x411   : > { %p1116_p0 = pnand %p1777_p10, %p1776_p8 }
 0x413   : > { %1259 = dma.done.wait (!%p1116_p0), %s1024_s25, 768  }
 0x414   : > { %1261 = vsyncadd (!%p1116_p0), %s1024_s25, 4294966528  ;;  %p19_p2 = scmp.ge.s32.totalorder %s1354_s27, 4   ;;  %s1778_s21 = smov %s1268_s22 }
 0x415   : > { %s1779_s22 = smov %s1272_s23  ;;  %s1780_s23 = smov %s1366_s30 }
 0x416   : > { %s1781_s24 = smov %s1354_s27  ;;  %21 = sbr.rel (!%p19_p2) target bundleno = 5 (0x5), region = 89 }
 0x41d   :  { %1029 = vsyncpa [#allocation3], 1 }
 0x41e   :  { %1031 = vsyncpa [#allocation3 + $0x1], 1 }
 0x41f   :  { %1032 = vsyncpa [#allocation4], 1 }
 0x420   :  { %1034 = vsyncpa [#allocation4 + $0x1], 1 }

</bundles_post_ra>
